<compile_context>
chip_gen: v6e
topology: v6e:2x2x1
jax: 0.10.0
libtpu: 0.0.40
codegen_flags: <defaults>
</compile_context>

<pallas_src>
import functools

import jax
import jax.numpy as jnp
from jax.experimental import pallas as pl
from jax.experimental.pallas import tpu as pltpu


def channel_attention_kernel(x_ref, w1_ref, b1_ref, w2_ref, b2_ref, out_ref,
                             *, inv_hw):
    """One batch tile of SE channel attention, entirely in VMEM.

    x_ref:   (BB, C, HW)  activation block (HW on lanes, native dtype)
    w1_ref:  (C, Hd)      fc1 weight, pre-transposed (f32)
    b1_ref:  (1, Hd)      fc1 bias (f32)
    w2_ref:  (Hd, C)      fc2 weight, pre-transposed (f32)
    b2_ref:  (1, C)       fc2 bias (f32)
    out_ref: (BB, C, HW)
    """
    x = x_ref[...]                                   # (BB, C, HW), native dtype
    BB, _, HW = x.shape

    # Global average pool over HW on the MXU: contract a ones row-vector with
    # the native-dtype tile (f32 accumulation), so no f32 copy of the whole
    # tile is ever materialized. Batched like the flash 'bqd,bkd->bqk' pattern.
    ones_row = jnp.full((BB, 1, HW), 1.0, dtype=x.dtype)
    pooled3 = jnp.einsum('bkh,bch->bkc', ones_row, x,
                         preferred_element_type=jnp.float32)    # (BB, 1, C)
    pooled = pooled3[:, 0, :] * inv_hw                          # (BB, C) f32

    # Tiny shared MLP: Linear -> ReLU -> Linear -> Sigmoid (f32 throughout).
    h = jnp.maximum(
        jnp.dot(pooled, w1_ref[...], preferred_element_type=jnp.float32)
        + b1_ref[...], 0.0)                                     # (BB, Hd)
    gate = jax.nn.sigmoid(
        jnp.dot(h, w2_ref[...], preferred_element_type=jnp.float32)
        + b2_ref[...])                                          # (BB, C)

    # Per-channel gating in the activation's native dtype (bf16 stays bf16).
    gate = gate.astype(out_ref.dtype)
    out_ref[...] = x * gate[:, :, None]


@functools.partial(jax.jit, static_argnames=("batch_block",))
def channel_attention(x, w1, b1, w2, b2, *, batch_block=None):
    """x: [B, C, H, W]; w1: [Hd, C]; b1: [Hd]; w2: [C, Hd]; b2: [C] (PyTorch layout)."""
    B, C, H, W = x.shape
    HW = H * W
    hidden = w1.shape[0]
    itemsize = x.dtype.itemsize

    # Metadata-only reshape: NCHW is contiguous, so (B, C, HW) costs no HBM traffic.
    x3 = x.reshape(B, C, HW)

    # Tiny weight re-layouts; folded by XLA under jit (done once per compile).
    w1t = w1.astype(jnp.float32).T                  # (C, Hd)
    w2t = w2.astype(jnp.float32).T                  # (Hd, C)
    b1r = b1.astype(jnp.float32).reshape(1, hidden)
    b2r = b2.astype(jnp.float32).reshape(1, C)

    # Generation-aware VMEM ceiling (64 MiB on v7x, 128 MiB on v5e/v6e).
    try:
        vmem_capacity = int(pltpu.get_tpu_info().vmem_capacity_bytes)
    except Exception:  # pragma: no cover - conservative fallback
        vmem_capacity = 64 << 20

    bytes_per_row = 2 * C * HW * itemsize           # in + out bytes per batch row

    if batch_block is None:
        # Per-block (in+out) byte budget: 8-16 MiB is past the HBM roofline
        # knee on every generation while 2x double-buffering stays well inside
        # VMEM (v7x: ~10 MiB blocks; v5e/v6e: 16 MiB blocks).
        block_budget = min(16 << 20, vmem_capacity // 6)
        batch_block = max(1, block_budget // max(1, bytes_per_row))
        # Guarantee >= 2 grid steps (>= 4 when the batch allows) so the DMA
        # pipeline has something to overlap and v7x can use both TensorCores.
        min_steps = 2 if B < 4 else 4
        batch_block = max(1, min(batch_block, pl.cdiv(B, min_steps)))
    batch_block = max(1, min(int(batch_block), B))

    grid = (pl.cdiv(B, batch_block),)               # partial last block handled by Pallas

    # Cover double-buffered in+out blocks plus resident weights / headroom.
    block_bytes = batch_block * bytes_per_row
    vmem_limit = max(16 << 20,
                     min(vmem_capacity * 3 // 4, 2 * block_bytes + (4 << 20)))

    kernel = functools.partial(channel_attention_kernel, inv_hw=1.0 / float(HW))

    flops = 2 * B * C * HW + 2 * (2 * B * C * hidden) + B * C * HW
    cost = pl.CostEstimate(flops=int(flops),
                           transcendentals=int(B * C),
                           bytes_accessed=int(2 * B * C * HW * itemsize))

    out3 = pl.pallas_call(
        kernel,
        out_shape=jax.ShapeDtypeStruct((B, C, HW), x.dtype),
        grid=grid,
        in_specs=[
            # TODO(synk): if profiling shows exposed DMA on v6e (short grids),
            # add pipeline_mode=pl.Buffered(3) here and on out_specs.
            pl.BlockSpec((batch_block, C, HW), lambda i: (i, 0, 0)),  # activations
            pl.BlockSpec((C, hidden), lambda i: (0, 0)),              # fc1 weight (resident)
            pl.BlockSpec((1, hidden), lambda i: (0, 0)),              # fc1 bias
            pl.BlockSpec((hidden, C), lambda i: (0, 0)),              # fc2 weight
            pl.BlockSpec((1, C), lambda i: (0, 0)),                   # fc2 bias
        ],
        out_specs=pl.BlockSpec((batch_block, C, HW), lambda i: (i, 0, 0)),
        compiler_params=pltpu.CompilerParams(
            # "parallel": batch steps are independent (megacore sharding on v7x).
            dimension_semantics=("parallel",),
            vmem_limit_bytes=int(vmem_limit)),
        cost_estimate=cost,
    )(x3, w1t, b1r, w2t, b2r)

    return out3.reshape(B, C, H, W)


def ref_channel_attention(x, w1, b1, w2, b2):
    """Pure-JAX reference matching the PyTorch forward."""
    pooled = jnp.mean(x, axis=(2, 3))                       # (B, C)
    h = jax.nn.relu(pooled @ w1.T + b1)                     # (B, Hd)
    gate = jax.nn.sigmoid(h @ w2.T + b2)                    # (B, C)
    return x * gate[:, :, None, None]


if __name__ == "__main__":
    key = jax.random.PRNGKey(0)
    kx, k1, k2, k3, k4 = jax.random.split(key, 5)

    # Small shapes consistent with the module: reduction_ratio=16 needs C >= 16.
    B, C, H, W = 2, 64, 16, 16
    reduction_ratio = 16
    hidden = C // reduction_ratio                            # 4

    x = jax.random.normal(kx, (B, C, H, W), dtype=jnp.float32)
    w1 = jax.random.normal(k1, (hidden, C), dtype=jnp.float32) * 0.1   # nn.Linear(C, C//r).weight
    b1 = jax.random.normal(k2, (hidden,), dtype=jnp.float32) * 0.1
    w2 = jax.random.normal(k3, (C, hidden), dtype=jnp.float32) * 0.1   # nn.Linear(C//r, C).weight
    b2 = jax.random.normal(k4, (C,), dtype=jnp.float32) * 0.1

    out = channel_attention(x, w1, b1, w2, b2)
    out = jax.block_until_ready(out)

    ref = ref_channel_attention(x, w1, b1, w2, b2)
    assert out.shape == (B, C, H, W)
    assert jnp.allclose(out, ref, rtol=1e-5, atol=1e-5), "mismatch vs reference"

    print("KERNEL_OK")
</pallas_src>

<mosaic_0001>
module attributes {stable_mosaic.version = 11 : i64} {
  func.func @channel_attention_kernel(%arg0: i32, %arg1: memref<1x64x256xf32, #tpu.memory_space<vmem>>, %arg2: memref<64x4xf32, #tpu.memory_space<vmem>>, %arg3: memref<1x4xf32, #tpu.memory_space<vmem>>, %arg4: memref<4x64xf32, #tpu.memory_space<vmem>>, %arg5: memref<1x64xf32, #tpu.memory_space<vmem>>, %arg6: memref<1x64x256xf32, #tpu.memory_space<vmem>>) attributes {dimension_semantics = [#tpu.dimension_semantics<parallel>], iteration_bounds = array<i64: 2>, scalar_prefetch = 0 : i64, scratch_operands = 0 : i64, tpu.core_type = #tpu.core_type<tc>, window_params = [{transform_indices = @transform_0, window_bounds = array<i64: 1, 64, 256>}, {pipeline_mode = #tpu.pipeline_mode<synchronous>, transform_indices = @transform_1, window_bounds = array<i64: 64, 4>}, {pipeline_mode = #tpu.pipeline_mode<synchronous>, transform_indices = @transform_2, window_bounds = array<i64: 1, 4>}, {pipeline_mode = #tpu.pipeline_mode<synchronous>, transform_indices = @transform_3, window_bounds = array<i64: 4, 64>}, {pipeline_mode = #tpu.pipeline_mode<synchronous>, transform_indices = @transform_4, window_bounds = array<i64: 1, 64>}, {transform_indices = @transform_5, window_bounds = array<i64: 1, 64, 256>}]} {
    %c0 = arith.constant 0 : index
    %c0_0 = arith.constant 0 : index
    %c0_1 = arith.constant 0 : index
    %0 = vector.load %arg1[%c0, %c0_0, %c0_1] : memref<1x64x256xf32, #tpu.memory_space<vmem>>, vector<1x64x256xf32>
    %cst = arith.constant 1.000000e+00 : f32
    %1 = vector.broadcast %cst : f32 to vector<1x1x256xf32>
    "tpu.trace_start"() <{level = 10 : i32, message = "bkh,bch->bkc"}> : () -> ()
    %cst_2 = arith.constant dense<0.000000e+00> : vector<1x1x64xf32>
    %2 = tpu.matmul %1, %0, %cst_2 {dimension_numbers = #tpu.dot_dimension_numbers<[2], [2], [1], [1], [0, 0, 0, 1, 1, 1], [0], [0]>} : vector<1x1x256xf32>, vector<1x64x256xf32>, vector<1x1x64xf32> -> vector<1x1x64xf32>
    "tpu.trace_stop"() : () -> ()
    %3 = vector.shape_cast %2 : vector<1x1x64xf32> to vector<1x64xf32>
    %cst_3 = arith.constant 3.906250e-03 : f32
    %4 = vector.broadcast %cst_3 : f32 to vector<1x64xf32>
    %5 = arith.mulf %3, %4 : vector<1x64xf32>
    %c0_4 = arith.constant 0 : index
    %c0_5 = arith.constant 0 : index
    %6 = vector.load %arg2[%c0_4, %c0_5] : memref<64x4xf32, #tpu.memory_space<vmem>>, vector<64x4xf32>
    %cst_6 = arith.constant dense<0.000000e+00> : vector<1x4xf32>
    %7 = tpu.matmul %5, %6, %cst_6 {dimension_numbers = #tpu.dot_dimension_numbers<[1], [0], [0], [1], [0, 0, 1, 1], [], []>} : vector<1x64xf32>, vector<64x4xf32>, vector<1x4xf32> -> vector<1x4xf32>
    %c0_7 = arith.constant 0 : index
    %c0_8 = arith.constant 0 : index
    %8 = vector.load %arg3[%c0_7, %c0_8] : memref<1x4xf32, #tpu.memory_space<vmem>>, vector<1x4xf32>
    %9 = arith.addf %7, %8 : vector<1x4xf32>
    %cst_9 = arith.constant 0.000000e+00 : f32
    %10 = vector.broadcast %cst_9 : f32 to vector<1x4xf32>
    %11 = arith.maximumf %9, %10 : vector<1x4xf32>
    %c0_10 = arith.constant 0 : index
    %c0_11 = arith.constant 0 : index
    %12 = vector.load %arg4[%c0_10, %c0_11] : memref<4x64xf32, #tpu.memory_space<vmem>>, vector<4x64xf32>
    %cst_12 = arith.constant dense<0.000000e+00> : vector<1x64xf32>
    %13 = tpu.matmul %11, %12, %cst_12 {dimension_numbers = #tpu.dot_dimension_numbers<[1], [0], [0], [1], [0, 0, 1, 1], [], []>} : vector<1x4xf32>, vector<4x64xf32>, vector<1x64xf32> -> vector<1x64xf32>
    %c0_13 = arith.constant 0 : index
    %c0_14 = arith.constant 0 : index
    %14 = vector.load %arg5[%c0_13, %c0_14] : memref<1x64xf32, #tpu.memory_space<vmem>>, vector<1x64xf32>
    %15 = arith.addf %13, %14 : vector<1x64xf32>
    %16 = arith.negf %15 : vector<1x64xf32>
    %17 = math.exp %16 : vector<1x64xf32>
    %cst_15 = arith.constant 1.000000e+00 : f32
    %18 = vector.broadcast %cst_15 : f32 to vector<1x64xf32>
    %19 = arith.addf %18, %17 : vector<1x64xf32>
    %20 = arith.divf %18, %19 : vector<1x64xf32>
    %21 = vector.shape_cast %20 : vector<1x64xf32> to vector<1x64x1xf32>
    %22 = vector.broadcast %21 : vector<1x64x1xf32> to vector<1x64x256xf32>
    %23 = arith.mulf %0, %22 : vector<1x64x256xf32>
    %c0_16 = arith.constant 0 : index
    %c0_17 = arith.constant 0 : index
    %c0_18 = arith.constant 0 : index
    %24 = vector.load %arg6[%c0_16, %c0_17, %c0_18] : memref<1x64x256xf32, #tpu.memory_space<vmem>>, vector<1x64x256xf32>
    tpu.vector_store %arg6[%c0_16, %c0_17, %c0_18], %23 {strides = array<i32>} : memref<1x64x256xf32, #tpu.memory_space<vmem>>, vector<1x64x256xf32>,
    return
  }
  func.func @transform_0(%arg0: i32) -> (i32, i32, i32) {
    %c0_i32 = arith.constant 0 : i32
    %c0_i32_0 = arith.constant 0 : i32
    %c0_i32_1 = arith.constant 0 : i32
    return %arg0, %c0_i32, %c0_i32_0 : i32, i32, i32
  }
  func.func @transform_1(%arg0: i32) -> (i32, i32) {
    %c0_i32 = arith.constant 0 : i32
    %c0_i32_0 = arith.constant 0 : i32
    %c0_i32_1 = arith.constant 0 : i32
    return %c0_i32, %c0_i32_0 : i32, i32
  }
  func.func @transform_2(%arg0: i32) -> (i32, i32) {
    %c0_i32 = arith.constant 0 : i32
    %c0_i32_0 = arith.constant 0 : i32
    %c0_i32_1 = arith.constant 0 : i32
    return %c0_i32, %c0_i32_0 : i32, i32
  }
  func.func @transform_3(%arg0: i32) -> (i32, i32) {
    %c0_i32 = arith.constant 0 : i32
    %c0_i32_0 = arith.constant 0 : i32
    %c0_i32_1 = arith.constant 0 : i32
    return %c0_i32, %c0_i32_0 : i32, i32
  }
  func.func @transform_4(%arg0: i32) -> (i32, i32) {
    %c0_i32 = arith.constant 0 : i32
    %c0_i32_0 = arith.constant 0 : i32
    %c0_i32_1 = arith.constant 0 : i32
    return %c0_i32, %c0_i32_0 : i32, i32
  }
  func.func @transform_5(%arg0: i32) -> (i32, i32, i32) {
    %c0_i32 = arith.constant 0 : i32
    %c0_i32_0 = arith.constant 0 : i32
    %c0_i32_1 = arith.constant 0 : i32
    return %arg0, %c0_i32, %c0_i32_0 : i32, i32, i32
  }
}

</mosaic_0001>

<bundles_post_ra>
// kernel: channel_attention.1
= control target key start
LH: loop header
LB: loop body
LE: loop exit
PB: predicated region body
PF: predicated region fallthrough
CT: control target
= control target key end

     0   :  { %s712_s18 = smov 0   ;;  %s868_s0 = inlined_call_operand.vmem [shape: f32[2,64,256], index: 0, kind: input, shape index: {}]   ;;  %s869_s1 = inlined_call_operand.vmem [shape: f32[64,4], index: 1, kind: input, shape index: {}]   ;;  %s870_s2 = inlined_call_operand.vmem [shape: f32[1,4], index: 2, kind: input, shape index: {}]   ;;  %s871_s3 = inlined_call_operand.vmem [shape: f32[4,64], index: 3, kind: input, shape index: {}]   ;;  %s872_s4 = inlined_call_operand.vmem [shape: f32[1,64], index: 4, kind: input, shape index: {}]   ;;  %s873_s5 = inlined_call_operand.vmem [shape: f32[2,64,256], index: 5, kind: output, shape index: {}]  }
   0x1 LB: > { %s604_s19 = sadd.s32 4294967295, %s677_s18   ;;  %p608_p0 = scmp.ge.s32.totalorder %s677_s18, 1  ;;  %s677_s18 = sphi %s712_s18, %s15_s18  }
   0x2   : > { %p187_p1 = scmp.lt.s32.totalorder %s677_s18, 3 }
   0x4   : > { %p188_p2 = pnand %p608_p0, %p187_p1 }
   0x5   : > { %p215_p3 = scmp.lt.s32.totalorder (!%p188_p2), %s604_s19, 1 }
   0x6   : > { %191 = sbr.rel (%p188_p2) target bundleno = 799 (0x31f), region = 40 }
   0xb   : > { %v319_v0 = vld [vmem:[%s869_s1 + $0x38] sm:$0xff]  ;;  %v679_v1 = vmov 1.0   ;;  %v680_v2 = vmov 0.0   ;;  %v318_v3 = vld [vmem:[%s869_s1 + $0x30] sm:$0xff]  ;;  %s875_s19 = smov (!%p215_p3, %s604_s19), 1  ;;  %v317_v4 = vld [vmem:[%s869_s1 + $0x28] sm:$0xff]  ;;  %v482_v42 = vlaneseq }
   0xc   : > { %305 = vmatprep.mubr.f32.mxu0 %v679_v1  ;;  %632 = vmatprep.subr.mxu1 %v680_v2  ;;  %s619_s26 = sshll.u32 %s875_s19, 7  ;;  %v316_v5 = vld [vmem:[%s869_s1 + $0x20] sm:$0xff]  ;;  %v315_v9 = vld [vmem:[%s869_s1 + $0x18] sm:$0xff]  ;;  %v314_v11 = vld [vmem:[%s869_s1 + $0x10] sm:$0xff]  ;;  %vm681_vm0 = vmmov 0   ;;  %vm321_vm1 = vcmask 523264  }
   0xd   : > { %633 = vmatpush3.msra.mxu1 %v319_v0  ;;  %s739_s29 = scalar_lea.vmem %s868_s0, %s619_s26  ;;  %v313_v24 = vld [vmem:[%s869_s1 + $0x8] sm:$0xff]  ;;  %v312_v25 = vld [vmem:[%s869_s1] sm:$0xff]  ;;  %648 = vmatprep.mubr.msk.f32.mxu1 %vm681_vm0, %v680_v2  ;;  %vm402_vm2 = vcmask 1043456   ;;  %vm398_vm3 = vcmask 31744   ;;  %v483_v43 = vshrl.u32 %v482_v42, 7  ;;  %s834_s25 = scalar_lea.vmem %s873_s5, %s619_s26 }
   0xe   : > { %634 = vmatprep.subr.mxu1 %v680_v2  ;;  %v746_v6 = vld [vmem:[%s739_s29 + $0x78] sm:$0xff]  ;;  %v749_v7 = vld [vmem:[%s739_s29 + $0x70] sm:$0xff]  ;;  %v752_v8 = vld [vmem:[%s739_s29 + $0x68] sm:$0xff] }
   0xf   : > { %635 = vmatpush3.msra.mxu1 %v318_v3  ;;  %257 = vmatprep.subr.mxu0 %v746_v6  ;;  %v762_v10 = vld [vmem:[%s739_s29 + $0x60] sm:$0xff]  ;;  %v769_v12 = vld [vmem:[%s739_s29 + $0x58] sm:$0xff]  ;;  %v775_v13 = vld [vmem:[%s739_s29 + $0x50] sm:$0xff]  ;;  %v484_v44 = vsub.s32 0, %v483_v43 }
  0x10   : > { %636 = vmatprep.subr.mxu1 %v680_v2  ;;  %258 = vmatpush1.xpose.msra.mxu0 %v749_v7  ;;  %v779_v14 = vld [vmem:[%s739_s29 + $0x48] sm:$0xff]  ;;  %v784_v15 = vld [vmem:[%s739_s29 + $0x40] sm:$0xff]  ;;  %v787_v16 = vld [vmem:[%s739_s29 + $0x38] sm:$0xff] }
  0x11   : > { %637 = vmatpush3.msra.mxu1 %v317_v4  ;;  %259 = vmatprep.subr.mxu0 %v752_v8  ;;  %v792_v17 = vld [vmem:[%s739_s29 + $0x30] sm:$0xff]  ;;  %v795_v18 = vld [vmem:[%s739_s29 + $0x28] sm:$0xff]  ;;  %v229_v19 = vld [vmem:[%s739_s29 + $0x20] sm:$0xff] }
  0x12   : > { %638 = vmatprep.subr.mxu1 %v680_v2  ;;  %v801_v20 = vld [vmem:[%s739_s29 + $0x18] sm:$0xff]  ;;  %v805_v21 = vld [vmem:[%s739_s29 + $0x10] sm:$0xff]  ;;  %v226_v22 = vld [vmem:[%s739_s29 + $0x8] sm:$0xff] }
  0x13   : > { %639 = vmatpush3.msra.mxu1 %v316_v5  ;;  %v225_v23 = vld [vmem:[%s739_s29] sm:$0xff] }
  0x14   : > { %640 = vmatprep.subr.mxu1 %v680_v2  ;;  %260 = vmatpush1.xpose.msra.mxu0 %v762_v10  ;;  %v396_v29 = vld [vmem:[%s871_s3] sm:$0xf] }
  0x15   : > { %641 = vmatpush3.msra.mxu1 %v315_v9  ;;  %261 = vmatprep.subr.mxu0 %v769_v12  ;;  %v320_v30 = vld [vmem:[%s870_s2] sm:$0x1] }
  0x16   : > { %642 = vmatprep.subr.mxu1 %v680_v2  ;;  %v397_v35 = vld [vmem:[%s872_s4] sm:$0x1] }
  0x17   : > { %643 = vmatpush3.msra.mxu1 %v314_v11 }
  0x18   : > { %644 = vmatprep.subr.mxu1 %v680_v2  ;;  %262 = vmatpush1.xpose.msra.mxu0 %v775_v13 }
  0x19   : > { %263 = vmatprep.subr.mxu0 %v779_v14  ;;  %645 = vmatpush3.msra.mxu1 %v313_v24 }
  0x1a   : > { %646 = vmatprep.subr.mxu1 %v680_v2 }
  0x1b   : > { %647 = vmatpush3.msra.mxu1 %v312_v25 }
  0x1c   : > { %264 = vmatpush1.xpose.msra.mxu0 %v784_v15  ;;  %651 = vmatprep.subr.mxu1 %v680_v2 }
  0x1d   : > { %265 = vmatprep.subr.mxu0 %v787_v16 }
  0x20   : > { %266 = vmatpush1.xpose.msra.mxu0 %v792_v17 }
  0x21   : > { %267 = vmatprep.subr.mxu0 %v795_v18 }
  0x24   : > { %268 = vmatpush1.xpose.msra.mxu0 %v229_v19 }
  0x25   : > { %269 = vmatprep.subr.mxu0 %v801_v20 }
  0x28   : > { %270 = vmatpush1.xpose.msra.mxu0 %v805_v21 }
  0x29   : > { %271 = vmatprep.subr.mxu0 %v226_v22 }
  0x2c   : > { %272 = vmatpush1.xpose.msra.mxu0 %v225_v23 }
  0x2f   : > { %306 = vmatmul.mubr.f32.vlgmr.msra.gmra.mxu0 %v679_v1 }
  0xef   : > { %v307_v26 = vpop.f32.mrf.mxu0 }
  0xf0   : > { %v311_v27 = vmul.f32 0.00390625, %v307_v26 }
  0xf1   : > { %v309_v28 = vpop.f32.mrf.mxu0 }
  0xf2   : > { %649 = vmatmul.mubr.msk.f32.vlgmr.msra.gmra.mxu1 %vm321_vm1, %v311_v27 }
  0xf3   : > { %653 = vmatprep.mubr.msk.f32.mxu1 %vm681_vm0, %v680_v2  ;;  %652 = vmatpush3.msk.msra.mxu1 %vm402_vm2, %v396_v29 }
 0x1b2   : > { %v391_v31 = vpop.f32.mrf.mxu1 }
 0x1b3   : > { %v392_v32 = vadd.f32 %v391_v31, %v320_v30 }
 0x1b4   : > { %v650_v33 = vpop.f32.mrf.mxu1 }
 0x1b5   : > { %v395_v34 = vmax.f32 %v392_v32, 0.0 }
 0x1b7   : > { %654 = vmatmul.mubr.msk.f32.vlgmr.msra.gmra.mxu1 %vm398_vm3, %v395_v34 }
 0x277   : > { %v472_v36 = vpop.f32.mrf.mxu1 }
 0x278   : > { %v473_v37 = vadd.f32 %v472_v36, %v397_v35 }
 0x279   : > { %v655_v38 = vpop.f32.mrf.mxu1 }
 0x27a   : > { %v616_v39 = vmul.f32 -1.442695, %v473_v37 }
 0x27c   : > { %667 = vpow2.f32 %v616_v39 }
 0x289   : > { %v668_v40 = vpop.eup %667 }
 0x28a   : > { %v479_v41 = vadd.f32 1.0, %v668_v40 }
 0x28c   : > { %669 = vrcp.f32 %v479_v41 }
 0x299   : > { %v670_v45 = vpop.eup %669 }
 0x29a   : > { %v485_v46 = vrot.slane %v670_v45, %v484_v44 }
 0x29c   : > { %495 = vbcast.lane.b32.xlu1 %v485_v46, 272  ;;  %487 = vbcast.lane.b32.xlu0 %v485_v46, 256 }
 0x2a0   : > { %499 = vbcast.lane.b32.xlu1 %v485_v46, 280  ;;  %491 = vbcast.lane.b32.xlu0 %v485_v46, 264 }
 0x2a4   : > { %507 = vbcast.lane.b32.xlu1 %v485_v46, 296  ;;  %503 = vbcast.lane.b32.xlu0 %v485_v46, 288 }
 0x2a8   : > { %515 = vbcast.lane.b32.xlu1 %v485_v46, 312  ;;  %511 = vbcast.lane.b32.xlu0 %v485_v46, 304 }
 0x30e   : > { %v496_v47 = vpop.permute.xlu1 %495  ;;  %v488_v48 = vpop.permute.xlu0 %487 }
 0x30f   : > { %v521_v49 = vmul.f32 %v496_v47, %v229_v19  ;;  %v522_v50 = vmul.f32 %v496_v47, %v795_v18  ;;  %v517_v51 = vmul.f32 %v488_v48, %v225_v23  ;;  %v518_v52 = vmul.f32 %v488_v48, %v226_v22 }
 0x311   : > { %537 = vst [vmem:[%s834_s25 + $0x20] sm:$0xff] %v521_v49  ;;  %538 = vst [vmem:[%s834_s25 + $0x28] sm:$0xff] %v522_v50 }
 0x312   : > { %533 = vst [vmem:[%s834_s25] sm:$0xff] %v517_v51  ;;  %534 = vst [vmem:[%s834_s25 + $0x8] sm:$0xff] %v518_v52  ;;  %v500_v53 = vpop.permute.xlu1 %499  ;;  %v492_v54 = vpop.permute.xlu0 %491 }
 0x313   : > { %v523_v55 = vmul.f32 %v500_v53, %v792_v17  ;;  %v524_v56 = vmul.f32 %v500_v53, %v787_v16  ;;  %v519_v57 = vmul.f32 %v492_v54, %v805_v21  ;;  %v520_v58 = vmul.f32 %v492_v54, %v801_v20 }
 0x315   : > { %539 = vst [vmem:[%s834_s25 + $0x30] sm:$0xff] %v523_v55  ;;  %540 = vst [vmem:[%s834_s25 + $0x38] sm:$0xff] %v524_v56 }
 0x316   : > { %535 = vst [vmem:[%s834_s25 + $0x10] sm:$0xff] %v519_v57  ;;  %536 = vst [vmem:[%s834_s25 + $0x18] sm:$0xff] %v520_v58  ;;  %v508_v59 = vpop.permute.xlu1 %507  ;;  %v504_v60 = vpop.permute.xlu0 %503 }
 0x317   : > { %v527_v61 = vmul.f32 %v508_v59, %v775_v13  ;;  %v528_v62 = vmul.f32 %v508_v59, %v769_v12  ;;  %v525_v63 = vmul.f32 %v504_v60, %v784_v15  ;;  %v526_v0 = vmul.f32 %v504_v60, %v779_v14 }
 0x319   : > { %543 = vst [vmem:[%s834_s25 + $0x50] sm:$0xff] %v527_v61  ;;  %544 = vst [vmem:[%s834_s25 + $0x58] sm:$0xff] %v528_v62 }
 0x31a   : > { %541 = vst [vmem:[%s834_s25 + $0x40] sm:$0xff] %v525_v63  ;;  %542 = vst [vmem:[%s834_s25 + $0x48] sm:$0xff] %v526_v0  ;;  %v516_v1 = vpop.permute.xlu1 %515  ;;  %v512_v2 = vpop.permute.xlu0 %511 }
 0x31b   : > { %v531_v3 = vmul.f32 %v516_v1, %v749_v7  ;;  %v532_v4 = vmul.f32 %v516_v1, %v746_v6  ;;  %v529_v5 = vmul.f32 %v512_v2, %v762_v10  ;;  %v530_v9 = vmul.f32 %v512_v2, %v752_v8 }
 0x31d   : > { %547 = vst [vmem:[%s834_s25 + $0x70] sm:$0xff] %v531_v3  ;;  %548 = vst [vmem:[%s834_s25 + $0x78] sm:$0xff] %v532_v4 }
 0x31e   : > { %545 = vst [vmem:[%s834_s25 + $0x60] sm:$0xff] %v529_v5  ;;  %546 = vst [vmem:[%s834_s25 + $0x68] sm:$0xff] %v530_v9 }
 0x31f PF: > { %s15_s18 = sadd.s32 1, %s677_s18  }
 0x320   : > { %p12_p4 = scmp.ge.s32.totalorder %s15_s18, 4  }
 0x322   :  { %14 = sbr.rel (!%p12_p4) target bundleno = 1 (0x1), region = 70 }

</bundles_post_ra>
